<compile_context>
chip_gen: v7x
topology: tpu7x:2x2x1
jax: 0.10.0
libtpu: 0.0.40
codegen_flags: <defaults>
</compile_context>

<pallas_src>
import functools

import jax
import jax.numpy as jnp
from jax import lax
from jax.experimental import pallas as pl
from jax.experimental.pallas import tpu as pltpu


def _multi_head_attention(h, a1_mat, a2t_mat, graph, *, n_heads, head_dim,
                          alpha, mxu_dtype):
    """Graph attention for all heads of one layer, fully in VMEM.

    h:        [N, n_heads*head_dim] f32 (projected features, heads concatenated)
    a1_mat:   [n_heads*head_dim, n_heads]   block-diagonal a1 stack (mxu_dtype)
    a2t_mat:  [n_heads, n_heads*head_dim]   block-diagonal a2^T stack (mxu_dtype)
    graph:    [N, N] f32
    returns:  [N, n_heads*head_dim] f32  (concat of per-head attn_k @ h_k)
    """
    hm = h.astype(mxu_dtype)
    # All heads' e1 / e2 in two small matmuls (instead of 2 per head); e2 comes
    # out directly as rows so no transpose is needed.
    e1 = lax.dot_general(hm, a1_mat, (((1,), (0,)), ((), ())),
                         preferred_element_type=jnp.float32)        # [N, H]
    e2t = lax.dot_general(a2t_mat, hm, (((1,), (1,)), ((), ())),
                          preferred_element_type=jnp.float32)       # [H, N]
    outs = []
    for k in range(n_heads):                                        # static, tiny
        s = e1[:, k:k + 1] + e2t[k:k + 1, :]                        # [N, N]
        s = jnp.where(s > 0, s, alpha * s)                          # LeakyReLU(alpha)
        s = s * graph
        s = jnp.where(s == 0.0, jnp.float32(-1e16), s)              # masked_fill_(eq 0)
        m = jnp.max(s, axis=-1, keepdims=True)
        p = jnp.exp(s - m)
        attn = p * pl.reciprocal(jnp.sum(p, axis=-1, keepdims=True), approx=True)
        hk = hm[:, k * head_dim:(k + 1) * head_dim]                 # [N, head_dim]
        outs.append(jnp.dot(attn.astype(mxu_dtype), hk,
                            preferred_element_type=jnp.float32))
    return outs[0] if n_heads == 1 else jnp.concatenate(outs, axis=-1)


def _gat_subnet_kernel(x_ref, g_ref, wh_ref, a1h_ref, a2h_ref, bh_ref,
                       wo_ref, a1o_ref, a2o_ref, bo_ref, o_ref,
                       *, n_heads, hid_c, alpha, slope, mxu_dtype):
    # x_ref:(Bb,N,Fin)  g_ref:(N,N)  wh_ref:(n_heads*hid_c,Fin)
    # a1h_ref:(n_heads*hid_c,n_heads)  a2h_ref:(n_heads,n_heads*hid_c)
    # bh_ref:(1,n_heads*hid_c)  wo_ref:(out_c,n_heads*hid_c)
    # a1o_ref:(out_c,1)  a2o_ref:(1,out_c)  bo_ref:(1,out_c)  o_ref:(Bb,N,out_c)
    bb, n, fin = x_ref.shape
    out_c = wo_ref.shape[0]

    graph = g_ref[...]                                              # f32 [N, N]
    xv = x_ref[...]
    x2 = xv[0] if bb == 1 else xv.reshape(bb * n, fin)              # [Bb*N, Fin]

    # h for every batch row in the block and every head: ONE MXU matmul
    # (bf16 operands, f32 accumulation).
    h_all = lax.dot_general(x2.astype(mxu_dtype), wh_ref[...].astype(mxu_dtype),
                            (((1,), (1,)), ((), ())),
                            preferred_element_type=jnp.float32)     # [Bb*N, H*hid]

    a1h = a1h_ref[...].astype(mxu_dtype)
    a2h = a2h_ref[...].astype(mxu_dtype)
    wo = wo_ref[...].astype(mxu_dtype)
    a1o = a1o_ref[...].astype(mxu_dtype)
    a2o = a2o_ref[...].astype(mxu_dtype)
    bh = bh_ref[...]                                                # f32 biases
    bo = bo_ref[...]

    for bi in range(bb):                                            # static, small
        h = h_all[bi * n:(bi + 1) * n, :]                           # [N, H*hid]
        # --- n_heads GraphAttentionLayers + concat (never leaves VMEM) ---
        hcat = _multi_head_attention(h, a1h, a2h, graph, n_heads=n_heads,
                                     head_dim=hid_c, alpha=alpha,
                                     mxu_dtype=mxu_dtype) + bh
        hcat = jnp.where(hcat > 0, hcat, slope * hcat)              # LeakyReLU(0.01)
        # --- output GraphAttentionLayer ---
        h2 = lax.dot_general(hcat.astype(mxu_dtype), wo, (((1,), (1,)), ((), ())),
                             preferred_element_type=jnp.float32)    # [N, out_c]
        out = _multi_head_attention(h2, a1o, a2o, graph, n_heads=1,
                                    head_dim=out_c, alpha=alpha,
                                    mxu_dtype=mxu_dtype) + bo
        out = jnp.where(out > 0, out, slope * out)                  # final LeakyReLU
        o_ref[bi] = out.astype(o_ref.dtype)


def gat_subnet(x, graph, params, *, alpha, slope=0.01, batch_block=1,
               mxu_dtype=jnp.bfloat16):
    """GATSubNet forward. x:[B,N,T] f32, graph:[N,N] f32 -> [B,N,out_c] f32."""
    B, N, Fin = x.shape
    heads = params["heads"]
    n_heads = len(heads)
    hid_c = heads[0]["W"].shape[0]
    c_h = n_heads * hid_c
    out_p = params["out"]
    out_c = out_p["W"].shape[0]
    assert B % batch_block == 0

    # ---- stack per-head parameters once (tiny, done outside the kernel) ----
    w_heads = jnp.concatenate([p["W"] for p in heads], axis=0)            # [C_h, Fin]
    b_heads = jnp.concatenate([p["b"] for p in heads], axis=0)[None, :]   # [1, C_h]
    a1_heads = jnp.zeros((c_h, n_heads), jnp.float32)
    a2t_heads = jnp.zeros((n_heads, c_h), jnp.float32)
    for k, p in enumerate(heads):
        a_vec = p["a"][:, 0]
        a1_heads = a1_heads.at[k * hid_c:(k + 1) * hid_c, k].set(a_vec[:hid_c])
        a2t_heads = a2t_heads.at[k, k * hid_c:(k + 1) * hid_c].set(a_vec[hid_c:])
    a1_out = out_p["a"][:out_c].reshape(out_c, 1)
    a2t_out = out_p["a"][out_c:].reshape(1, out_c)
    b_out = out_p["b"][None, :]

    kernel = functools.partial(
        _gat_subnet_kernel, n_heads=n_heads, hid_c=hid_c,
        alpha=float(alpha), slope=float(slope), mxu_dtype=mxu_dtype)

    bcast = lambda i: (0, 0)  # parameters: same (resident) block every grid step
    return pl.pallas_call(
        kernel,
        out_shape=jax.ShapeDtypeStruct((B, N, out_c), jnp.float32),
        grid_spec=pltpu.PrefetchScalarGridSpec(
            num_scalar_prefetch=0,
            grid=(B // batch_block,),
            in_specs=[
                pl.BlockSpec((batch_block, N, Fin), lambda i: (i, 0, 0)),  # x
                pl.BlockSpec((N, N), bcast),           # graph
                pl.BlockSpec((c_h, Fin), bcast),       # stacked head W
                pl.BlockSpec((c_h, n_heads), bcast),   # block-diag a1 (heads)
                pl.BlockSpec((n_heads, c_h), bcast),   # block-diag a2^T (heads)
                pl.BlockSpec((1, c_h), bcast),         # concat head bias
                pl.BlockSpec((out_c, c_h), bcast),     # output-layer W
                pl.BlockSpec((out_c, 1), bcast),       # output-layer a1
                pl.BlockSpec((1, out_c), bcast),       # output-layer a2^T
                pl.BlockSpec((1, out_c), bcast),       # output-layer bias
            ],
            out_specs=pl.BlockSpec((batch_block, N, out_c), lambda i: (i, 0, 0)),
        ),
        compiler_params=pltpu.CompilerParams(
            dimension_semantics=("parallel",)),
    )(x, graph, w_heads, a1_heads, a2t_heads, b_heads,
      out_p["W"], a1_out, a2t_out, b_out)


# ------------------------------- init helpers -------------------------------
# NOTE: the PyTorch module uses std-1 normal init, which drives the attention
# logits to O(100) and makes the chained softmax chaotically sensitive to ANY
# precision change (bf16 MXU vs f32).  scale=0.1 keeps logits O(1) so the
# bf16-MXU kernel can be validated against an exact f32 reference at a tight
# tolerance.  The kernel itself is init-agnostic.
def init_gat_params(key, in_c, out_c, scale=0.1):
    kw, ka, kb = jax.random.split(key, 3)
    return {
        "W": scale * jax.random.normal(kw, (out_c, in_c), jnp.float32),  # nn.Linear layout
        "a": scale * jax.random.normal(ka, (2 * out_c, 1), jnp.float32),
        "b": scale * jax.random.normal(kb, (out_c,), jnp.float32),
    }


def init_gat_subnet_params(key, in_c, hid_c, out_c, n_heads, scale=0.1):
    keys = jax.random.split(key, n_heads + 1)
    return {
        "heads": [init_gat_params(keys[i], in_c, hid_c, scale) for i in range(n_heads)],
        "out": init_gat_params(keys[-1], hid_c * n_heads, out_c, scale),
    }


# ----------------------------- pure-JAX reference -----------------------------
def _gat_layer_ref(x, graph, W, a, b, alpha):
    out_c = W.shape[0]
    hi = lax.Precision.HIGHEST
    h = jnp.einsum("bnf,of->bno", x, W, precision=hi)
    e1 = jnp.einsum("bno,o->bn", h, a[:out_c, 0], precision=hi)
    e2 = jnp.einsum("bno,o->bn", h, a[out_c:, 0], precision=hi)
    s = e1[:, :, None] + e2[:, None, :]
    s = jnp.where(s > 0, s, alpha * s)
    s = s * graph[None]
    s = jnp.where(s == 0.0, -1e16, s)
    attn = jax.nn.softmax(s, axis=2)
    return jnp.einsum("bij,bjo->bio", attn, h, precision=hi) + b


def _gat_subnet_ref(x, graph, params, alpha, slope=0.01):
    lrelu = lambda v: jnp.where(v > 0, v, slope * v)
    hs = [_gat_layer_ref(x, graph, p["W"], p["a"], p["b"], alpha)
          for p in params["heads"]]
    hcat = lrelu(jnp.concatenate(hs, axis=-1))
    op = params["out"]
    return lrelu(_gat_layer_ref(hcat, graph, op["W"], op["a"], op["b"], alpha))


if __name__ == "__main__":
    B, N, T = 2, 16, 8          # batch, nodes, input feature length (in_c = T)
    hid_c, out_c, n_heads, alpha = 16, 8, 4, 0.2

    key = jax.random.PRNGKey(0)
    k_x, k_g, k_p = jax.random.split(key, 3)

    x = jax.random.normal(k_x, (B, N, T), jnp.float32)
    # binary adjacency with self-loops
    graph = (jax.random.uniform(k_g, (N, N)) > 0.5).astype(jnp.float32)
    graph = jnp.maximum(graph, jnp.eye(N, dtype=jnp.float32))

    params = init_gat_subnet_params(k_p, T, hid_c, out_c, n_heads)

    out = gat_subnet(x, graph, params, alpha=alpha)
    out = jax.block_until_ready(out)

    ref = _gat_subnet_ref(x, graph, params, alpha)
    assert out.shape == (B, N, out_c), out.shape
    err = float(jnp.max(jnp.abs(out - ref)))
    # bf16 MXU operands + approx reciprocal vs. f32-HIGHEST reference.
    assert jnp.allclose(out, ref, rtol=2e-2, atol=2e-2), err
    print("KERNEL_OK")
</pallas_src>

<mosaic_0001>
module attributes {stable_mosaic.version = 11 : i64} {
  func.func @_gat_subnet_kernel(%arg0: i32, %arg1: memref<1x16x8xf32, #tpu.memory_space<vmem>>, %arg2: memref<16x16xf32, #tpu.memory_space<vmem>>, %arg3: memref<64x8xf32, #tpu.memory_space<vmem>>, %arg4: memref<64x4xf32, #tpu.memory_space<vmem>>, %arg5: memref<4x64xf32, #tpu.memory_space<vmem>>, %arg6: memref<1x64xf32, #tpu.memory_space<vmem>>, %arg7: memref<8x64xf32, #tpu.memory_space<vmem>>, %arg8: memref<8x1xf32, #tpu.memory_space<vmem>>, %arg9: memref<1x8xf32, #tpu.memory_space<vmem>>, %arg10: memref<1x8xf32, #tpu.memory_space<vmem>>, %arg11: memref<1x16x8xf32, #tpu.memory_space<vmem>>) attributes {dimension_semantics = [#tpu.dimension_semantics<parallel>], iteration_bounds = array<i64: 2>, scalar_prefetch = 0 : i64, scratch_operands = 0 : i64, tpu.core_type = #tpu.core_type<tc>, window_params = [{transform_indices = @transform_0, window_bounds = array<i64: 1, 16, 8>}, {pipeline_mode = #tpu.pipeline_mode<synchronous>, transform_indices = @transform_1, window_bounds = array<i64: 16, 16>}, {pipeline_mode = #tpu.pipeline_mode<synchronous>, transform_indices = @transform_2, window_bounds = array<i64: 64, 8>}, {pipeline_mode = #tpu.pipeline_mode<synchronous>, transform_indices = @transform_3, window_bounds = array<i64: 64, 4>}, {pipeline_mode = #tpu.pipeline_mode<synchronous>, transform_indices = @transform_4, window_bounds = array<i64: 4, 64>}, {pipeline_mode = #tpu.pipeline_mode<synchronous>, transform_indices = @transform_5, window_bounds = array<i64: 1, 64>}, {pipeline_mode = #tpu.pipeline_mode<synchronous>, transform_indices = @transform_6, window_bounds = array<i64: 8, 64>}, {pipeline_mode = #tpu.pipeline_mode<synchronous>, transform_indices = @transform_7, window_bounds = array<i64: 8, 1>}, {pipeline_mode = #tpu.pipeline_mode<synchronous>, transform_indices = @transform_8, window_bounds = array<i64: 1, 8>}, {pipeline_mode = #tpu.pipeline_mode<synchronous>, transform_indices = @transform_9, window_bounds = array<i64: 1, 8>}, {transform_indices = @transform_10, window_bounds = array<i64: 1, 16, 8>}]} {
    %c0 = arith.constant 0 : index
    %c0_0 = arith.constant 0 : index
    %0 = vector.load %arg2[%c0, %c0_0] : memref<16x16xf32, #tpu.memory_space<vmem>>, vector<16x16xf32>
    %c0_1 = arith.constant 0 : index
    %c0_2 = arith.constant 0 : index
    %c0_3 = arith.constant 0 : index
    %1 = vector.load %arg1[%c0_1, %c0_2, %c0_3] : memref<1x16x8xf32, #tpu.memory_space<vmem>>, vector<1x16x8xf32>
    %2 = vector.shape_cast %1 : vector<1x16x8xf32> to vector<16x8xf32>
    %3 = arith.truncf %2 : vector<16x8xf32> to vector<16x8xbf16>
    %c0_4 = arith.constant 0 : index
    %c0_5 = arith.constant 0 : index
    %4 = vector.load %arg3[%c0_4, %c0_5] : memref<64x8xf32, #tpu.memory_space<vmem>>, vector<64x8xf32>
    %5 = arith.truncf %4 : vector<64x8xf32> to vector<64x8xbf16>
    %cst = arith.constant dense<0.000000e+00> : vector<16x64xf32>
    %6 = tpu.matmul %3, %5, %cst {dimension_numbers = #tpu.dot_dimension_numbers<[1], [1], [0], [0], [0, 0, 1, 0], [], []>} : vector<16x8xbf16>, vector<64x8xbf16>, vector<16x64xf32> -> vector<16x64xf32>
    %c0_6 = arith.constant 0 : index
    %c0_7 = arith.constant 0 : index
    %7 = vector.load %arg4[%c0_6, %c0_7] : memref<64x4xf32, #tpu.memory_space<vmem>>, vector<64x4xf32>
    %8 = arith.truncf %7 : vector<64x4xf32> to vector<64x4xbf16>
    %c0_8 = arith.constant 0 : index
    %c0_9 = arith.constant 0 : index
    %9 = vector.load %arg5[%c0_8, %c0_9] : memref<4x64xf32, #tpu.memory_space<vmem>>, vector<4x64xf32>
    %10 = arith.truncf %9 : vector<4x64xf32> to vector<4x64xbf16>
    %c0_10 = arith.constant 0 : index
    %c0_11 = arith.constant 0 : index
    %11 = vector.load %arg7[%c0_10, %c0_11] : memref<8x64xf32, #tpu.memory_space<vmem>>, vector<8x64xf32>
    %12 = arith.truncf %11 : vector<8x64xf32> to vector<8x64xbf16>
    %c0_12 = arith.constant 0 : index
    %c0_13 = arith.constant 0 : index
    %13 = vector.load %arg8[%c0_12, %c0_13] : memref<8x1xf32, #tpu.memory_space<vmem>>, vector<8x1xf32>
    %14 = arith.truncf %13 : vector<8x1xf32> to vector<8x1xbf16>
    %c0_14 = arith.constant 0 : index
    %c0_15 = arith.constant 0 : index
    %15 = vector.load %arg9[%c0_14, %c0_15] : memref<1x8xf32, #tpu.memory_space<vmem>>, vector<1x8xf32>
    %16 = arith.truncf %15 : vector<1x8xf32> to vector<1x8xbf16>
    %c0_16 = arith.constant 0 : index
    %c0_17 = arith.constant 0 : index
    %17 = vector.load %arg6[%c0_16, %c0_17] : memref<1x64xf32, #tpu.memory_space<vmem>>, vector<1x64xf32>
    %c0_18 = arith.constant 0 : index
    %c0_19 = arith.constant 0 : index
    %18 = vector.load %arg10[%c0_18, %c0_19] : memref<1x8xf32, #tpu.memory_space<vmem>>, vector<1x8xf32>
    %19 = arith.truncf %6 : vector<16x64xf32> to vector<16x64xbf16>
    %cst_20 = arith.constant dense<0.000000e+00> : vector<16x4xf32>
    %20 = tpu.matmul %19, %8, %cst_20 {dimension_numbers = #tpu.dot_dimension_numbers<[1], [0], [0], [1], [0, 0, 1, 1], [], []>} : vector<16x64xbf16>, vector<64x4xbf16>, vector<16x4xf32> -> vector<16x4xf32>
    %cst_21 = arith.constant dense<0.000000e+00> : vector<4x16xf32>
    %21 = tpu.matmul %10, %19, %cst_21 {dimension_numbers = #tpu.dot_dimension_numbers<[1], [1], [0], [0], [0, 0, 1, 0], [], []>} : vector<4x64xbf16>, vector<16x64xbf16>, vector<4x16xf32> -> vector<4x16xf32>
    %22 = vector.extract_strided_slice %20 {offsets = [0, 0], sizes = [16, 1], strides = [1, 1]} : vector<16x4xf32> to vector<16x1xf32>
    %23 = vector.extract_strided_slice %21 {offsets = [0, 0], sizes = [1, 16], strides = [1, 1]} : vector<4x16xf32> to vector<1x16xf32>
    %24 = vector.broadcast %22 : vector<16x1xf32> to vector<16x16xf32>
    %25 = vector.broadcast %23 : vector<1x16xf32> to vector<16x16xf32>
    %26 = arith.addf %24, %25 : vector<16x16xf32>
    %cst_22 = arith.constant 0.000000e+00 : f32
    %27 = vector.broadcast %cst_22 : f32 to vector<16x16xf32>
    %28 = arith.cmpf ogt, %26, %27 : vector<16x16xf32>
    %cst_23 = arith.constant 2.000000e-01 : f32
    %29 = vector.broadcast %cst_23 : f32 to vector<16x16xf32>
    %30 = arith.mulf %29, %26 : vector<16x16xf32>
    %31 = arith.select %28, %26, %30 : vector<16x16xi1>, vector<16x16xf32>
    %32 = arith.mulf %31, %0 : vector<16x16xf32>
    %cst_24 = arith.constant 0.000000e+00 : f32
    %33 = vector.broadcast %cst_24 : f32 to vector<16x16xf32>
    %34 = arith.cmpf oeq, %32, %33 : vector<16x16xf32>
    %cst_25 = arith.constant -1.000000e+16 : f32
    %35 = vector.broadcast %cst_25 : f32 to vector<16x16xf32>
    %36 = arith.select %34, %35, %32 : vector<16x16xi1>, vector<16x16xf32>
    %cst_26 = arith.constant dense<0xFF800000> : vector<16xf32>
    %37 = vector.multi_reduction <maximumf>, %36, %cst_26 [1] : vector<16x16xf32> to vector<16xf32>
    %38 = vector.shape_cast %37 : vector<16xf32> to vector<16x1xf32>
    %39 = vector.broadcast %38 : vector<16x1xf32> to vector<16x16xf32>
    %40 = arith.subf %36, %39 : vector<16x16xf32>
    %41 = math.exp %40 : vector<16x16xf32>
    %cst_27 = arith.constant dense<0.000000e+00> : vector<16xf32>
    %42 = vector.multi_reduction <add>, %41, %cst_27 [1] : vector<16x16xf32> to vector<16xf32>
    %43 = vector.shape_cast %42 : vector<16xf32> to vector<16x1xf32>
    %44 = tpu.reciprocal %43 {approx = true} : vector<16x1xf32> -> vector<16x1xf32>
    %45 = vector.broadcast %44 : vector<16x1xf32> to vector<16x16xf32>
    %46 = arith.mulf %41, %45 : vector<16x16xf32>
    %47 = vector.extract_strided_slice %19 {offsets = [0, 0], sizes = [16, 16], strides = [1, 1]} : vector<16x64xbf16> to vector<16x16xbf16>
    %48 = arith.truncf %46 : vector<16x16xf32> to vector<16x16xbf16>
    %cst_28 = arith.constant dense<0.000000e+00> : vector<16x16xf32>
    %49 = tpu.matmul %48, %47, %cst_28 {dimension_numbers = #tpu.dot_dimension_numbers<[1], [0], [0], [1], [0, 0, 1, 1], [], []>} : vector<16x16xbf16>, vector<16x16xbf16>, vector<16x16xf32> -> vector<16x16xf32>
    %50 = vector.extract_strided_slice %20 {offsets = [0, 1], sizes = [16, 1], strides = [1, 1]} : vector<16x4xf32> to vector<16x1xf32>
    %51 = vector.extract_strided_slice %21 {offsets = [1, 0], sizes = [1, 16], strides = [1, 1]} : vector<4x16xf32> to vector<1x16xf32>
    %52 = vector.broadcast %50 : vector<16x1xf32> to vector<16x16xf32>
    %53 = vector.broadcast %51 : vector<1x16xf32> to vector<16x16xf32>
    %54 = arith.addf %52, %53 : vector<16x16xf32>
    %cst_29 = arith.constant 0.000000e+00 : f32
    %55 = vector.broadcast %cst_29 : f32 to vector<16x16xf32>
    %56 = arith.cmpf ogt, %54, %55 : vector<16x16xf32>
    %cst_30 = arith.constant 2.000000e-01 : f32
    %57 = vector.broadcast %cst_30 : f32 to vector<16x16xf32>
    %58 = arith.mulf %57, %54 : vector<16x16xf32>
    %59 = arith.select %56, %54, %58 : vector<16x16xi1>, vector<16x16xf32>
    %60 = arith.mulf %59, %0 : vector<16x16xf32>
    %cst_31 = arith.constant 0.000000e+00 : f32
    %61 = vector.broadcast %cst_31 : f32 to vector<16x16xf32>
    %62 = arith.cmpf oeq, %60, %61 : vector<16x16xf32>
    %cst_32 = arith.constant -1.000000e+16 : f32
    %63 = vector.broadcast %cst_32 : f32 to vector<16x16xf32>
    %64 = arith.select %62, %63, %60 : vector<16x16xi1>, vector<16x16xf32>
    %cst_33 = arith.constant dense<0xFF800000> : vector<16xf32>
    %65 = vector.multi_reduction <maximumf>, %64, %cst_33 [1] : vector<16x16xf32> to vector<16xf32>
    %66 = vector.shape_cast %65 : vector<16xf32> to vector<16x1xf32>
    %67 = vector.broadcast %66 : vector<16x1xf32> to vector<16x16xf32>
    %68 = arith.subf %64, %67 : vector<16x16xf32>
    %69 = math.exp %68 : vector<16x16xf32>
    %cst_34 = arith.constant dense<0.000000e+00> : vector<16xf32>
    %70 = vector.multi_reduction <add>, %69, %cst_34 [1] : vector<16x16xf32> to vector<16xf32>
    %71 = vector.shape_cast %70 : vector<16xf32> to vector<16x1xf32>
    %72 = tpu.reciprocal %71 {approx = true} : vector<16x1xf32> -> vector<16x1xf32>
    %73 = vector.broadcast %72 : vector<16x1xf32> to vector<16x16xf32>
    %74 = arith.mulf %69, %73 : vector<16x16xf32>
    %75 = vector.extract_strided_slice %19 {offsets = [0, 16], sizes = [16, 16], strides = [1, 1]} : vector<16x64xbf16> to vector<16x16xbf16>
    %76 = arith.truncf %74 : vector<16x16xf32> to vector<16x16xbf16>
    %cst_35 = arith.constant dense<0.000000e+00> : vector<16x16xf32>
    %77 = tpu.matmul %76, %75, %cst_35 {dimension_numbers = #tpu.dot_dimension_numbers<[1], [0], [0], [1], [0, 0, 1, 1], [], []>} : vector<16x16xbf16>, vector<16x16xbf16>, vector<16x16xf32> -> vector<16x16xf32>
    %78 = vector.extract_strided_slice %20 {offsets = [0, 2], sizes = [16, 1], strides = [1, 1]} : vector<16x4xf32> to vector<16x1xf32>
    %79 = vector.extract_strided_slice %21 {offsets = [2, 0], sizes = [1, 16], strides = [1, 1]} : vector<4x16xf32> to vector<1x16xf32>
    %80 = vector.broadcast %78 : vector<16x1xf32> to vector<16x16xf32>
    %81 = vector.broadcast %79 : vector<1x16xf32> to vector<16x16xf32>
    %82 = arith.addf %80, %81 : vector<16x16xf32>
    %cst_36 = arith.constant 0.000000e+00 : f32
    %83 = vector.broadcast %cst_36 : f32 to vector<16x16xf32>
    %84 = arith.cmpf ogt, %82, %83 : vector<16x16xf32>
    %cst_37 = arith.constant 2.000000e-01 : f32
    %85 = vector.broadcast %cst_37 : f32 to vector<16x16xf32>
    %86 = arith.mulf %85, %82 : vector<16x16xf32>
    %87 = arith.select %84, %82, %86 : vector<16x16xi1>, vector<16x16xf32>
    %88 = arith.mulf %87, %0 : vector<16x16xf32>
    %cst_38 = arith.constant 0.000000e+00 : f32
    %89 = vector.broadcast %cst_38 : f32 to vector<16x16xf32>
    %90 = arith.cmpf oeq, %88, %89 : vector<16x16xf32>
    %cst_39 = arith.constant -1.000000e+16 : f32
    %91 = vector.broadcast %cst_39 : f32 to vector<16x16xf32>
    %92 = arith.select %90, %91, %88 : vector<16x16xi1>, vector<16x16xf32>
    %cst_40 = arith.constant dense<0xFF800000> : vector<16xf32>
    %93 = vector.multi_reduction <maximumf>, %92, %cst_40 [1] : vector<16x16xf32> to vector<16xf32>
    %94 = vector.shape_cast %93 : vector<16xf32> to vector<16x1xf32>
    %95 = vector.broadcast %94 : vector<16x1xf32> to vector<16x16xf32>
    %96 = arith.subf %92, %95 : vector<16x16xf32>
    %97 = math.exp %96 : vector<16x16xf32>
    %cst_41 = arith.constant dense<0.000000e+00> : vector<16xf32>
    %98 = vector.multi_reduction <add>, %97, %cst_41 [1] : vector<16x16xf32> to vector<16xf32>
    %99 = vector.shape_cast %98 : vector<16xf32> to vector<16x1xf32>
    %100 = tpu.reciprocal %99 {approx = true} : vector<16x1xf32> -> vector<16x1xf32>
    %101 = vector.broadcast %100 : vector<16x1xf32> to vector<16x16xf32>
    %102 = arith.mulf %97, %101 : vector<16x16xf32>
    %103 = vector.extract_strided_slice %19 {offsets = [0, 32], sizes = [16, 16], strides = [1, 1]} : vector<16x64xbf16> to vector<16x16xbf16>
    %104 = arith.truncf %102 : vector<16x16xf32> to vector<16x16xbf16>
    %cst_42 = arith.constant dense<0.000000e+00> : vector<16x16xf32>
    %105 = tpu.matmul %104, %103, %cst_42 {dimension_numbers = #tpu.dot_dimension_numbers<[1], [0], [0], [1], [0, 0, 1, 1], [], []>} : vector<16x16xbf16>, vector<16x16xbf16>, vector<16x16xf32> -> vector<16x16xf32>
    %106 = vector.extract_strided_slice %20 {offsets = [0, 3], sizes = [16, 1], strides = [1, 1]} : vector<16x4xf32> to vector<16x1xf32>
    %107 = vector.extract_strided_slice %21 {offsets = [3, 0], sizes = [1, 16], strides = [1, 1]} : vector<4x16xf32> to vector<1x16xf32>
    %108 = vector.broadcast %106 : vector<16x1xf32> to vector<16x16xf32>
    %109 = vector.broadcast %107 : vector<1x16xf32> to vector<16x16xf32>
    %110 = arith.addf %108, %109 : vector<16x16xf32>
    %cst_43 = arith.constant 0.000000e+00 : f32
    %111 = vector.broadcast %cst_43 : f32 to vector<16x16xf32>
    %112 = arith.cmpf ogt, %110, %111 : vector<16x16xf32>
    %cst_44 = arith.constant 2.000000e-01 : f32
    %113 = vector.broadcast %cst_44 : f32 to vector<16x16xf32>
    %114 = arith.mulf %113, %110 : vector<16x16xf32>
    %115 = arith.select %112, %110, %114 : vector<16x16xi1>, vector<16x16xf32>
    %116 = arith.mulf %115, %0 : vector<16x16xf32>
    %cst_45 = arith.constant 0.000000e+00 : f32
    %117 = vector.broadcast %cst_45 : f32 to vector<16x16xf32>
    %118 = arith.cmpf oeq, %116, %117 : vector<16x16xf32>
    %cst_46 = arith.constant -1.000000e+16 : f32
    %119 = vector.broadcast %cst_46 : f32 to vector<16x16xf32>
    %120 = arith.select %118, %119, %116 : vector<16x16xi1>, vector<16x16xf32>
    %cst_47 = arith.constant dense<0xFF800000> : vector<16xf32>
    %121 = vector.multi_reduction <maximumf>, %120, %cst_47 [1] : vector<16x16xf32> to vector<16xf32>
    %122 = vector.shape_cast %121 : vector<16xf32> to vector<16x1xf32>
    %123 = vector.broadcast %122 : vector<16x1xf32> to vector<16x16xf32>
    %124 = arith.subf %120, %123 : vector<16x16xf32>
    %125 = math.exp %124 : vector<16x16xf32>
    %cst_48 = arith.constant dense<0.000000e+00> : vector<16xf32>
    %126 = vector.multi_reduction <add>, %125, %cst_48 [1] : vector<16x16xf32> to vector<16xf32>
    %127 = vector.shape_cast %126 : vector<16xf32> to vector<16x1xf32>
    %128 = tpu.reciprocal %127 {approx = true} : vector<16x1xf32> -> vector<16x1xf32>
    %129 = vector.broadcast %128 : vector<16x1xf32> to vector<16x16xf32>
    %130 = arith.mulf %125, %129 : vector<16x16xf32>
    %131 = vector.extract_strided_slice %19 {offsets = [0, 48], sizes = [16, 16], strides = [1, 1]} : vector<16x64xbf16> to vector<16x16xbf16>
    %132 = arith.truncf %130 : vector<16x16xf32> to vector<16x16xbf16>
    %cst_49 = arith.constant dense<0.000000e+00> : vector<16x16xf32>
    %133 = tpu.matmul %132, %131, %cst_49 {dimension_numbers = #tpu.dot_dimension_numbers<[1], [0], [0], [1], [0, 0, 1, 1], [], []>} : vector<16x16xbf16>, vector<16x16xbf16>, vector<16x16xf32> -> vector<16x16xf32>
    %134 = tpu.concatenate %49, %77, %105, %133 in 1 : vector<16x16xf32>, vector<16x16xf32>, vector<16x16xf32>, vector<16x16xf32> -> vector<16x64xf32>
    %135 = vector.broadcast %17 : vector<1x64xf32> to vector<16x64xf32>
    %136 = arith.addf %134, %135 : vector<16x64xf32>
    %cst_50 = arith.constant 0.000000e+00 : f32
    %137 = vector.broadcast %cst_50 : f32 to vector<16x64xf32>
    %138 = arith.cmpf ogt, %136, %137 : vector<16x64xf32>
    %cst_51 = arith.constant 0.00999999977 : f32
    %139 = vector.broadcast %cst_51 : f32 to vector<16x64xf32>
    %140 = arith.mulf %139, %136 : vector<16x64xf32>
    %141 = arith.select %138, %136, %140 : vector<16x64xi1>, vector<16x64xf32>
    %142 = arith.truncf %141 : vector<16x64xf32> to vector<16x64xbf16>
    %cst_52 = arith.constant dense<0.000000e+00> : vector<16x8xf32>
    %143 = tpu.matmul %142, %12, %cst_52 {dimension_numbers = #tpu.dot_dimension_numbers<[1], [1], [0], [0], [0, 0, 1, 0], [], []>} : vector<16x64xbf16>, vector<8x64xbf16>, vector<16x8xf32> -> vector<16x8xf32>
    %144 = arith.truncf %143 : vector<16x8xf32> to vector<16x8xbf16>
    %cst_53 = arith.constant dense<0.000000e+00> : vector<16x1xf32>
    %145 = tpu.matmul %144, %14, %cst_53 {dimension_numbers = #tpu.dot_dimension_numbers<[1], [0], [0], [1], [0, 0, 1, 1], [], []>} : vector<16x8xbf16>, vector<8x1xbf16>, vector<16x1xf32> -> vector<16x1xf32>
    %cst_54 = arith.constant dense<0.000000e+00> : vector<1x16xf32>
    %146 = tpu.matmul %16, %144, %cst_54 {dimension_numbers = #tpu.dot_dimension_numbers<[1], [1], [0], [0], [0, 0, 1, 0], [], []>} : vector<1x8xbf16>, vector<16x8xbf16>, vector<1x16xf32> -> vector<1x16xf32>
    %147 = vector.broadcast %145 : vector<16x1xf32> to vector<16x16xf32>
    %148 = vector.broadcast %146 : vector<1x16xf32> to vector<16x16xf32>
    %149 = arith.addf %147, %148 : vector<16x16xf32>
    %cst_55 = arith.constant 0.000000e+00 : f32
    %150 = vector.broadcast %cst_55 : f32 to vector<16x16xf32>
    %151 = arith.cmpf ogt, %149, %150 : vector<16x16xf32>
    %cst_56 = arith.constant 2.000000e-01 : f32
    %152 = vector.broadcast %cst_56 : f32 to vector<16x16xf32>
    %153 = arith.mulf %152, %149 : vector<16x16xf32>
    %154 = arith.select %151, %149, %153 : vector<16x16xi1>, vector<16x16xf32>
    %155 = arith.mulf %154, %0 : vector<16x16xf32>
    %cst_57 = arith.constant 0.000000e+00 : f32
    %156 = vector.broadcast %cst_57 : f32 to vector<16x16xf32>
    %157 = arith.cmpf oeq, %155, %156 : vector<16x16xf32>
    %cst_58 = arith.constant -1.000000e+16 : f32
    %158 = vector.broadcast %cst_58 : f32 to vector<16x16xf32>
    %159 = arith.select %157, %158, %155 : vector<16x16xi1>, vector<16x16xf32>
    %cst_59 = arith.constant dense<0xFF800000> : vector<16xf32>
    %160 = vector.multi_reduction <maximumf>, %159, %cst_59 [1] : vector<16x16xf32> to vector<16xf32>
    %161 = vector.shape_cast %160 : vector<16xf32> to vector<16x1xf32>
    %162 = vector.broadcast %161 : vector<16x1xf32> to vector<16x16xf32>
    %163 = arith.subf %159, %162 : vector<16x16xf32>
    %164 = math.exp %163 : vector<16x16xf32>
    %cst_60 = arith.constant dense<0.000000e+00> : vector<16xf32>
    %165 = vector.multi_reduction <add>, %164, %cst_60 [1] : vector<16x16xf32> to vector<16xf32>
    %166 = vector.shape_cast %165 : vector<16xf32> to vector<16x1xf32>
    %167 = tpu.reciprocal %166 {approx = true} : vector<16x1xf32> -> vector<16x1xf32>
    %168 = vector.broadcast %167 : vector<16x1xf32> to vector<16x16xf32>
    %169 = arith.mulf %164, %168 : vector<16x16xf32>
    %170 = arith.truncf %169 : vector<16x16xf32> to vector<16x16xbf16>
    %cst_61 = arith.constant dense<0.000000e+00> : vector<16x8xf32>
    %171 = tpu.matmul %170, %144, %cst_61 {dimension_numbers = #tpu.dot_dimension_numbers<[1], [0], [0], [1], [0, 0, 1, 1], [], []>} : vector<16x16xbf16>, vector<16x8xbf16>, vector<16x8xf32> -> vector<16x8xf32>
    %172 = vector.broadcast %18 : vector<1x8xf32> to vector<16x8xf32>
    %173 = arith.addf %171, %172 : vector<16x8xf32>
    %cst_62 = arith.constant 0.000000e+00 : f32
    %174 = vector.broadcast %cst_62 : f32 to vector<16x8xf32>
    %175 = arith.cmpf ogt, %173, %174 : vector<16x8xf32>
    %cst_63 = arith.constant 0.00999999977 : f32
    %176 = vector.broadcast %cst_63 : f32 to vector<16x8xf32>
    %177 = arith.mulf %176, %173 : vector<16x8xf32>
    %178 = arith.select %175, %173, %177 : vector<16x8xi1>, vector<16x8xf32>
    %c0_64 = arith.constant 0 : index
    %c0_65 = arith.constant 0 : index
    %c0_66 = arith.constant 0 : index
    %179 = vector.load %arg11[%c0_64, %c0_65, %c0_66] : memref<1x16x8xf32, #tpu.memory_space<vmem>>, vector<1x16x8xf32>
    %180 = vector.shape_cast %179 : vector<1x16x8xf32> to vector<16x8xf32>
    %181 = vector.shape_cast %178 : vector<16x8xf32> to vector<1x16x8xf32>
    tpu.vector_store %arg11[%c0_64, %c0_65, %c0_66], %181 {strides = array<i32>} : memref<1x16x8xf32, #tpu.memory_space<vmem>>, vector<1x16x8xf32>,
    return
  }
  func.func @transform_0(%arg0: i32) -> (i32, i32, i32) {
    %c0_i32 = arith.constant 0 : i32
    %c0_i32_0 = arith.constant 0 : i32
    %c0_i32_1 = arith.constant 0 : i32
    return %arg0, %c0_i32, %c0_i32_0 : i32, i32, i32
  }
  func.func @transform_1(%arg0: i32) -> (i32, i32) {
    %c0_i32 = arith.constant 0 : i32
    %c0_i32_0 = arith.constant 0 : i32
    %c0_i32_1 = arith.constant 0 : i32
    return %c0_i32, %c0_i32_0 : i32, i32
  }
  func.func @transform_2(%arg0: i32) -> (i32, i32) {
    %c0_i32 = arith.constant 0 : i32
    %c0_i32_0 = arith.constant 0 : i32
    %c0_i32_1 = arith.constant 0 : i32
    return %c0_i32, %c0_i32_0 : i32, i32
  }
  func.func @transform_3(%arg0: i32) -> (i32, i32) {
    %c0_i32 = arith.constant 0 : i32
    %c0_i32_0 = arith.constant 0 : i32
    %c0_i32_1 = arith.constant 0 : i32
    return %c0_i32, %c0_i32_0 : i32, i32
  }
  func.func @transform_4(%arg0: i32) -> (i32, i32) {
    %c0_i32 = arith.constant 0 : i32
    %c0_i32_0 = arith.constant 0 : i32
    %c0_i32_1 = arith.constant 0 : i32
    return %c0_i32, %c0_i32_0 : i32, i32
  }
  func.func @transform_5(%arg0: i32) -> (i32, i32) {
    %c0_i32 = arith.constant 0 : i32
    %c0_i32_0 = arith.constant 0 : i32
    %c0_i32_1 = arith.constant 0 : i32
    return %c0_i32, %c0_i32_0 : i32, i32
  }
  func.func @transform_6(%arg0: i32) -> (i32, i32) {
    %c0_i32 = arith.constant 0 : i32
    %c0_i32_0 = arith.constant 0 : i32
    %c0_i32_1 = arith.constant 0 : i32
    return %c0_i32, %c0_i32_0 : i32, i32
  }
  func.func @transform_7(%arg0: i32) -> (i32, i32) {
    %c0_i32 = arith.constant 0 : i32
    %c0_i32_0 = arith.constant 0 : i32
    %c0_i32_1 = arith.constant 0 : i32
    return %c0_i32, %c0_i32_0 : i32, i32
  }
  func.func @transform_8(%arg0: i32) -> (i32, i32) {
    %c0_i32 = arith.constant 0 : i32
    %c0_i32_0 = arith.constant 0 : i32
    %c0_i32_1 = arith.constant 0 : i32
    return %c0_i32, %c0_i32_0 : i32, i32
  }
  func.func @transform_9(%arg0: i32) -> (i32, i32) {
    %c0_i32 = arith.constant 0 : i32
    %c0_i32_0 = arith.constant 0 : i32
    %c0_i32_1 = arith.constant 0 : i32
    return %c0_i32, %c0_i32_0 : i32, i32
  }
  func.func @transform_10(%arg0: i32) -> (i32, i32, i32) {
    %c0_i32 = arith.constant 0 : i32
    %c0_i32_0 = arith.constant 0 : i32
    %c0_i32_1 = arith.constant 0 : i32
    return %arg0, %c0_i32, %c0_i32_0 : i32, i32, i32
  }
}

</mosaic_0001>

<bundles_post_ra>
// kernel: tpu_custom_call.1
= control target key start
LH: loop header
LB: loop body
LE: loop exit
PB: predicated region body
PF: predicated region fallthrough
CT: control target
= control target key end

     0   :  { %s1556_s13 = smov 0   ;;  %s1775_s0 = inlined_call_operand.vmem [shape: f32[2,16,8], index: 0, kind: input, shape index: {}]   ;;  %s1776_s1 = inlined_call_operand.vmem [shape: f32[16,16], index: 1, kind: input, shape index: {}]   ;;  %s1777_s2 = inlined_call_operand.vmem [shape: f32[64,8], index: 2, kind: input, shape index: {}]   ;;  %s1778_s3 = inlined_call_operand.vmem [shape: f32[64,4], index: 3, kind: input, shape index: {}]   ;;  %s1779_s4 = inlined_call_operand.vmem [shape: f32[4,64], index: 4, kind: input, shape index: {}]   ;;  %s1780_s5 = inlined_call_operand.vmem [shape: f32[1,64], index: 5, kind: input, shape index: {}]   ;;  %s1781_s6 = inlined_call_operand.vmem [shape: f32[8,64], index: 6, kind: input, shape index: {}]   ;;  %s1782_s7 = inlined_call_operand.vmem [shape: f32[8,1], index: 7, kind: input, shape index: {}]   ;;  %s1783_s8 = inlined_call_operand.vmem [shape: f32[1,8], index: 8, kind: input, shape index: {}]   ;;  %s1784_s9 = inlined_call_operand.vmem [shape: f32[1,8], index: 9, kind: input, shape index: {}]   ;;  %s1785_s10 = inlined_call_operand.vmem [shape: f32[2,16,8], index: 10, kind: output, shape index: {}]  }
   0x1 LB: > { %s1281_s14 = sadd.s32 4294967295, %s1487_s13   ;;  %p1285_p0 = scmp.ge.s32.totalorder %s1487_s13, 1  ;;  %s1487_s13 = sphi %s1556_s13, %s20_s13  }
   0x2   : > { %p312_p1 = scmp.lt.s32.totalorder %s1487_s13, 3 }
   0x4   : > { %p313_p2 = pnand %p1285_p0, %p312_p1 }
   0x5   : > { %v366_v0 = vld [vmem:[%s1777_s2] sm:$0xff] (!%p313_p2)  ;;  %v367_v1 = vld [vmem:[%s1777_s2 + $0x8] sm:$0xff] (!%p313_p2)  ;;  %vm378_vm0 = vcmask (!%p313_p2), 64512   ;;  %v1489_v2 = vmov (!%p313_p2), 0.0   ;;  %vm1490_vm1 = vmmov (!%p313_p2), 0   ;;  %v368_v4 = vld [vmem:[%s1777_s2 + $0x10] sm:$0xff] (!%p313_p2)  ;;  %v556_v52 = vlaneseq (!%p313_p2) }
   0x6   : > { %316 = sbr.rel (%p313_p2) target bundleno = 2378 (0x94a), region = 60  ;;  %1335 = vmatprep.subr.bf16.mxu0 (!%p313_p2), %v1489_v2  ;;  %v374_v3 = vpack.c.bf16 (!%p313_p2), %v367_v1, %v366_v0  ;;  %1343 = vmatprep.mubr.msk.bf16.mxu0 (!%p313_p2), %vm1490_vm1, %v1489_v2  ;;  %v369_v5 = vld [vmem:[%s1777_s2 + $0x18] sm:$0xff] (!%p313_p2)  ;;  %v435_v6 = vld [vmem:[%s1778_s3] sm:$0xff] (!%p313_p2)  ;;  %v436_v8 = vld [vmem:[%s1778_s3 + $0x8] sm:$0xff] (!%p313_p2)  ;;  %p350_p3 = scmp.lt.s32.totalorder (!%p313_p2), %s1281_s14, 1  ;;  %v1491_v32 = vmov (!%p313_p2), 1  }
   0x7   : > { %1347 = vmatprep.subr.bf16.mxu1 (!%p313_p2), %v1489_v2  ;;  %1355 = vmatprep.mubr.msk.bf16.mxu1 (!%p313_p2), %vm1490_vm1, %v1489_v2  ;;  %v437_v9 = vld [vmem:[%s1778_s3 + $0x10] sm:$0xff] (!%p313_p2)  ;;  %v438_v10 = vld [vmem:[%s1778_s3 + $0x18] sm:$0xff] (!%p313_p2)  ;;  %v443_v11 = vpack.c.bf16 (!%p313_p2), %v436_v8, %v435_v6  ;;  %v375_v12 = vpack.c.bf16 (!%p313_p2), %v369_v5, %v368_v4  ;;  %v439_v14 = vld [vmem:[%s1778_s3 + $0x20] sm:$0xff] (!%p313_p2)  ;;  %v1492_v33 = vmov (!%p313_p2), 0   ;;  %vm458_vm2 = vcmask (!%p313_p2), 523264   ;;  %s1495_s21 = smov (!%p313_p2), 112  }
   0x8   : > { %v383_v7 = vsel (!%p313_p2), %vm378_vm0, %v374_v3, 0  ;;  %v444_v13 = vpack.c.bf16 (!%p313_p2), %v438_v10, %v437_v9  ;;  %v440_v15 = vld [vmem:[%s1778_s3 + $0x28] sm:$0xff] (!%p313_p2)  ;;  %v370_v17 = vld [vmem:[%s1777_s2 + $0x20] sm:$0xff] (!%p313_p2)  ;;  %v441_v20 = vld [vmem:[%s1778_s3 + $0x30] sm:$0xff] (!%p313_p2)  ;;  %1434 = vset.pattern.permute.xlu1 (!%p313_p2), %v1491_v32  ;;  %1433 = vset.pattern.permute.xlu0 (!%p313_p2), %v1492_v33  ;;  %v1493_v47 = vmov (!%p313_p2), 2   ;;  %v1494_v51 = vmov (!%p313_p2), 3  }
   0x9   : > { %1336 = vmatpush3.bf16.xpose.msra.mxu0 (!%p313_p2), %v383_v7  ;;  %1348 = vmatpush3.bf16.msra.mxu1 (!%p313_p2), %v443_v11  ;;  %v386_v16 = vsel (!%p313_p2), %vm378_vm0, %v375_v12, 0  ;;  %v371_v18 = vld [vmem:[%s1777_s2 + $0x28] sm:$0xff] (!%p313_p2)  ;;  %v445_v19 = vpack.c.bf16 (!%p313_p2), %v440_v15, %v439_v14  ;;  %v442_v21 = vld [vmem:[%s1778_s3 + $0x38] sm:$0xff] (!%p313_p2)  ;;  %v372_v25 = vld [vmem:[%s1777_s2 + $0x30] sm:$0xff] (!%p313_p2)  ;;  %v1664_v53 = vshrl.u32 (!%p313_p2), %v556_v52, 7  ;;  %vm574_vm5 = vcmask (!%p313_p2), 130048  }
   0xa   : > { %1337 = vmatprep.subr.bf16.mxu0 (!%p313_p2), %v1489_v2  ;;  %1349 = vmatprep.subr.bf16.mxu1 (!%p313_p2), %v1489_v2  ;;  %v376_v22 = vpack.c.bf16 (!%p313_p2), %v371_v18, %v370_v17  ;;  %v446_v23 = vpack.c.bf16 (!%p313_p2), %v442_v21, %v441_v20  ;;  %v373_v26 = vld [vmem:[%s1777_s2 + $0x38] sm:$0xff] (!%p313_p2)  ;;  %v447_v40 = vld [vmem:[%s1779_s4] sm:$0xf] (!%p313_p2)  ;;  %v1682_v10 = vld [vmem:[%s1776_s1 + $0x8] sm:$0xff] (!%p313_p2)  ;;  %s1496_s22 = smov (!%p313_p2), 80   ;;  %s1497_s23 = smov (!%p313_p2), 96  }
   0xb   : > { %v377_v27 = vpack.c.bf16 (!%p313_p2), %v373_v26, %v372_v25  ;;  %v448_v41 = vpack.c.bf16 (!%p313_p2), %v447_v40, %v447_v40  ;;  %v652_v54 = vsub.s32 (!%p313_p2), 1, %v1664_v53  ;;  %v558_v55 = vsub.s32 (!%p313_p2), 0, %v1664_v53  ;;  %v1675_v62 = vld [vmem:[%s1776_s1] sm:$0xff] (!%p313_p2)  ;;  %s1498_s26 = smov (!%p313_p2), 16   ;;  %s1499_s27 = smov (!%p313_p2), 32  }
   0xc   : > { %v389_v24 = vsel (!%p313_p2), %vm378_vm0, %v376_v22, 0  ;;  %v749_v4 = vsub.s32 (!%p313_p2), 2, %v1664_v53  ;;  %v845_v18 = vsub.s32 (!%p313_p2), 3, %v1664_v53  ;;  %s1500_s11 = smov (!%p313_p2), 48  }
   0xd   : > { %1350 = vmatpush3.bf16.msra.mxu1 %v444_v13  ;;  %s1787_s14 = smov (!%p350_p3, %s1281_s14), 1  ;;  %v392_v28 = vsel %vm378_vm0, %v377_v27, 0 }
   0xe   : > { %1351 = vmatprep.subr.bf16.mxu1 %v1489_v2  ;;  %s1305_s29 = sshll.u32 %s1787_s14, 4 }
   0xf   : > { %s354_s12 = scalar_lea.vmem %s1775_s0, %s1305_s29 }
  0x10   : > { %v363_v29 = vld [vmem:[%s354_s12] sm:$0xff]  ;;  %v364_v30 = vld [vmem:[%s354_s12 + $0x8] sm:$0xff] }
  0x11   : > { %1338 = vmatpush3.bf16.xpose.msra.mxu0 %v386_v16  ;;  %1352 = vmatpush3.bf16.msra.mxu1 %v445_v19  ;;  %v365_v31 = vpack.c.bf16 %v364_v30, %v363_v29 }
  0x12   : > { %1339 = vmatprep.subr.bf16.mxu0 %v1489_v2  ;;  %1353 = vmatprep.subr.bf16.mxu1 %v1489_v2 }
  0x15   : > { %1354 = vmatpush3.bf16.msra.mxu1 %v446_v23 }
  0x16   : > { %1359 = vmatprep.subr.bf16.mxu1 %v1489_v2 }
  0x19   : > { %1340 = vmatpush3.bf16.xpose.msra.mxu0 %v389_v24 }
  0x1a   : > { %1341 = vmatprep.subr.bf16.mxu0 %v1489_v2 }
  0x21   : > { %1342 = vmatpush3.bf16.xpose.msra.mxu0 %v392_v28 }
  0x22   : > { %1371 = vmatprep.subr.bf16.mxu0 %v1489_v2 }
  0x28   : > { %1344 = vmatmul.mubr.msk.bf16.vlgmr.msra.gmra.mrb[0].mxu0 %vm378_vm0, %v365_v31 }
  0x29   : > { %1373 = vmatprep.mubr.msk.bf16.mxu0 %vm1490_vm1, %v1489_v2 }
  0xfb   : > { %v428_v34 = vpop.f32.mrb[0].mxu0 }
  0xfc   : > { %v1345_v35 = vpop.f32.mrb[1].mxu0 }
  0xfd   : > { %v431_v36 = vpop.f32.mrb[2].mxu0 }
  0xfe   : > { %v1645_v37 = vpack.c.bf16 %v431_v36, %v428_v34  ;;  %v1346_v38 = vpop.f32.mrb[3].mxu0 }
 0x100   : > { %1356 = vmatmul.mubr.msk.bf16.vlgmr.msra.gmra.mrb[0].mxu1 %vm458_vm2, %v1645_v37  ;;  %v460_v39 = vsel %vm458_vm2, %v1645_v37, 0 }
 0x101   : > { %1360 = vmatpush3.bf16.xpose.msra.mxu1 %v460_v39  ;;  %1361 = vmatprep.mubr.msk.bf16.mxu1 %vm1490_vm1, %v1489_v2 }
 0x102   : > { %1365 = vmatprep.subr.bf16.mxu1 %v1489_v2 }
 0x108   : > { %1362 = vmatmul.mubr.msk.bf16.vlgmr.msra.gmra.mrb[4].mxu1 %vm458_vm2, %v448_v41 }
 0x109   : > { %1366 = vmatpush3.bf16.msra.mxu1 %v1645_v37  ;;  %1367 = vmatprep.mubr.msk.bf16.mxu1 %vm1490_vm1, %v1489_v2 }
 0x10a   : > { %1377 = vmatprep.subr.bf16.mxu1 %v1489_v2 }
 0x1d3   : > { %v496_v42 = vpop.f32.mrb[0].mxu1 }
 0x1d4   : > { %643 = vperm.xlu1 %1434, %v496_v42   ;;  %548 = vperm.xlu0 %1433, %v496_v42   ;;  %v1357_v43 = vpop.f32.mrb[1].mxu1 }
 0x1d5   : > { %v499_v44 = vpop.f32.mrb[2].mxu1 }
 0x1d6   : > { %v1358_v45 = vpop.f32.mrb[3].mxu1 }
 0x1d8   : > { %647 = vperm.xlu1 %1434, %v499_v44   ;;  %553 = vperm.xlu0 %1433, %v499_v44  }
 0x1db   : > { %v1662_v46 = vpop.f32.mrb[4].mxu1 }
 0x1dc   : > { %1436 = vset.pattern.permute.xlu1 %v1493_v47  ;;  %1435 = vset.pattern.permute.xlu0 %v1493_v47  ;;  %v1363_v48 = vpop.f32.mrb[5].mxu1  ;;  %v653_v56 = vrot.slane %v1662_v46, %v652_v54  ;;  %v559_v57 = vrot.slane %v1662_v46, %v558_v55  ;;  %v750_v14 = vrot.slane %v1662_v46, %v749_v4 }
 0x1dd   : > { %744 = vperm.xlu1 %1436, %v499_v44   ;;  %740 = vperm.xlu0 %1435, %v496_v42   ;;  %v543_v49 = vpop.f32.mrb[6].mxu1  ;;  %v846_v29 = vrot.slane %v1662_v46, %v845_v18 }
 0x1de   : > { %v1364_v50 = vpop.f32.mrb[7].mxu1 }
 0x1e1   : > { %1437 = vset.pattern.permute.xlu1 %v1494_v51  ;;  %1438 = vset.pattern.permute.xlu0 %v1494_v51 }
 0x1e2   : > { %836 = vperm.xlu1 %1437, %v496_v42   ;;  %840 = vperm.xlu0 %1438, %v499_v44  }
 0x1e6   : > { %1439 = vset.pattern.permute.xlu1 %v1492_v33  ;;  %1440 = vset.pattern.permute.xlu0 %v1492_v33 }
 0x253   : > { %v644_v58 = vpop.permute.xlu1 %643  ;;  %v549_v59 = vpop.permute.xlu0 %548 }
 0x254   : > { %v654_v60 = vadd.f32 %v653_v56, %v644_v58  ;;  %v560_v61 = vadd.f32 %v559_v57, %v549_v59 }
 0x256   : > { %vm656_vm3 = vcmp.gt.f32.partialorder %v654_v60, 0.0  ;;  %v658_v63 = vmul.f32 0.2, %v654_v60  ;;  %vm562_vm4 = vcmp.gt.f32.partialorder %v560_v61, 0.0  ;;  %v564_v0 = vmul.f32 0.2, %v560_v61 }
 0x257   : > { %v648_v1 = vpop.permute.xlu1 %647  ;;  %v554_v3 = vpop.permute.xlu0 %553 }
 0x258   : > { %v655_v5 = vadd.f32 %v653_v56, %v648_v1  ;;  %v561_v6 = vadd.f32 %v559_v57, %v554_v3  ;;  %v566_v7 = vsel %vm562_vm4, %v560_v61, %v564_v0  ;;  %v660_v8 = vsel %vm656_vm3, %v654_v60, %v658_v63 }
 0x259   : > { %v568_v9 = vmul.f32 %v566_v7, %v1675_v62  ;;  %v662_v11 = vmul.f32 %v660_v8, %v1675_v62 }
 0x25a   : > { %vm657_vm6 = vcmp.gt.f32.partialorder %v655_v5, 0.0  ;;  %v659_v12 = vmul.f32 0.2, %v655_v5  ;;  %vm563_vm7 = vcmp.gt.f32.partialorder %v561_v6, 0.0  ;;  %v565_v13 = vmul.f32 0.2, %v561_v6 }
 0x25b   : > { %vm570_vm8 = vcmp.eq.f32.partialorder %v568_v9, 0.0  ;;  %vm664_vm9 = vcmp.eq.f32.partialorder %v662_v11, 0.0 }
 0x25c   : > { %v745_v15 = vpop.permute.xlu1 %744  ;;  %v741_v16 = vpop.permute.xlu0 %740  ;;  %v572_v17 = vsel %vm570_vm8, -1e+16, %v568_v9  ;;  %v567_v19 = vsel %vm563_vm7, %v561_v6, %v565_v13  ;;  %v661_v20 = vsel %vm657_vm6, %v655_v5, %v659_v12  ;;  %v666_v25 = vsel %vm664_vm9, -1e+16, %v662_v11 }
 0x25d   : > { %v752_v21 = vadd.f32 %v750_v14, %v745_v15  ;;  %v751_v22 = vadd.f32 %v750_v14, %v741_v16  ;;  %v575_v23 = vsel %vm574_vm5, %v572_v17, -inf  ;;  %v569_v24 = vmul.f32 %v567_v19, %v1682_v10 }
 0x25e   : > { %576 = vmax.xlane.f32.xlu1 %v575_v23  ;;  %v663_v26 = vmul.f32 %v661_v20, %v1682_v10  ;;  %v668_v33 = vsel %vm574_vm5, %v666_v25, -inf  ;;  %vm1029_vm8 = vcmask 1043456   ;;  %vm957_vm9 = vcmask 261120  }
 0x25f   : > { %vm754_vm10 = vcmp.gt.f32.partialorder %v752_v21, 0.0  ;;  %v756_v27 = vmul.f32 0.2, %v752_v21  ;;  %vm753_vm11 = vcmp.gt.f32.partialorder %v751_v22, 0.0  ;;  %v755_v28 = vmul.f32 0.2, %v751_v22 }
 0x260   : > { %vm571_vm12 = vcmp.eq.f32.partialorder %v569_v24, 0.0  ;;  %vm665_vm13 = vcmp.eq.f32.partialorder %v663_v26, 0.0 }
 0x261   : > { %v837_v30 = vpop.permute.xlu1 %836  ;;  %v841_v31 = vpop.permute.xlu0 %840  ;;  %v573_v32 = vsel %vm571_vm12, -1e+16, %v569_v24  ;;  %v757_v34 = vsel %vm753_vm11, %v751_v22, %v755_v28  ;;  %v758_v35 = vsel %vm754_vm10, %v752_v21, %v756_v27  ;;  %v667_v40 = vsel %vm665_vm13, -1e+16, %v663_v26 }
 0x262   : > { %v847_v36 = vadd.f32 %v846_v29, %v837_v30  ;;  %v848_v38 = vadd.f32 %v846_v29, %v841_v31  ;;  %v578_v39 = vsel %vm574_vm5, %v573_v32, -inf  ;;  %669 = vmax.xlane.f32.xlu1 %v668_v33  ;;  %v759_v41 = vmul.f32 %v757_v34, %v1675_v62 }
 0x263   : > { %579 = vmax.xlane.f32.xlu0 %v578_v39  ;;  %v760_v42 = vmul.f32 %v758_v35, %v1682_v10  ;;  %v671_v45 = vsel %vm574_vm5, %v667_v40, -inf  ;;  %vm960_vm10 = vcmask 392192  }
 0x264   : > { %vm849_vm14 = vcmp.gt.f32.partialorder %v847_v36, 0.0  ;;  %v851_v43 = vmul.f32 0.2, %v847_v36  ;;  %vm850_vm15 = vcmp.gt.f32.partialorder %v848_v38, 0.0  ;;  %v852_v44 = vmul.f32 0.2, %v848_v38 }
 0x265   : > { %vm761_vm3 = vcmp.eq.f32.partialorder %v759_v41, 0.0  ;;  %vm762_vm4 = vcmp.eq.f32.partialorder %v760_v42, 0.0 }
 0x266   : > { %v763_v46 = vsel %vm761_vm3, -1e+16, %v759_v41  ;;  %v853_v47 = vsel %vm849_vm14, %v847_v36, %v851_v43  ;;  %v854_v48 = vsel %vm850_vm15, %v848_v38, %v852_v44  ;;  %v764_v50 = vsel %vm762_vm4, -1e+16, %v760_v42 }
 0x267   : > { %672 = vmax.xlane.f32.xlu0 %v671_v45  ;;  %v765_v49 = vsel %vm574_vm5, %v763_v46, -inf  ;;  %v855_v51 = vmul.f32 %v853_v47, %v1675_v62  ;;  %v856_v52 = vmul.f32 %v854_v48, %v1682_v10  ;;  %v768_v54 = vsel %vm574_vm5, %v764_v50, -inf }
 0x268   : > { %766 = vmax.xlane.f32.xlu1 %v765_v49 }
 0x269   : > { %vm857_vm6 = vcmp.eq.f32.partialorder %v855_v51, 0.0  ;;  %vm858_vm7 = vcmp.eq.f32.partialorder %v856_v52, 0.0 }
 0x26a   : > { %v859_v56 = vsel %vm857_vm6, -1e+16, %v855_v51  ;;  %v860_v58 = vsel %vm858_vm7, -1e+16, %v856_v52 }
 0x26b   : > { %769 = vmax.xlane.f32.xlu0 %v768_v54  ;;  %v861_v57 = vsel %vm574_vm5, %v859_v56, -inf  ;;  %v864_v59 = vsel %vm574_vm5, %v860_v58, -inf }
 0x26c   : > { %862 = vmax.xlane.f32.xlu1 %v861_v57 }
 0x26f   : > { %865 = vmax.xlane.f32.xlu0 %v864_v59 }
 0x27d   : > { %692 = vrot.lane.b32.xlu1 %v1645_v37, %s1495_s21 }
 0x2eb   : > { %v577_v60 = vpop.xlane.xlu1 %576 }
 0x2ec   : > { %v581_v61 = vsub.f32 %v572_v17, %v577_v60 }
 0x2ee   : > { %v583_v63 = vmul.f32 1.442695, %v581_v61 }
 0x2ef   : > { %v670_v0 = vpop.xlane.xlu1 %669 }
 0x2f0   : > { %1441 = vpow2.f32 %v583_v63  ;;  %v580_v1 = vpop.xlane.xlu0 %579  ;;  %v674_v3 = vsub.f32 %v666_v25, %v670_v0 }
 0x2f1   : > { %v582_v4 = vsub.f32 %v573_v32, %v580_v1 }
 0x2f2   : > { %v676_v5 = vmul.f32 1.442695, %v674_v3 }
 0x2f3   : > { %v585_v6 = vmul.f32 1.442695, %v582_v4 }
 0x2f4   : > { %1443 = vpow2.f32 %v676_v5  ;;  %v673_v7 = vpop.xlane.xlu0 %672 }
 0x2f5   : > { %1445 = vpow2.f32 %v585_v6  ;;  %v675_v8 = vsub.f32 %v667_v40, %v673_v7  ;;  %v767_v9 = vpop.xlane.xlu1 %766 }
 0x2f6   : > { %v771_v11 = vsub.f32 %v763_v46, %v767_v9 }
 0x2f7   : > { %v678_v12 = vmul.f32 1.442695, %v675_v8 }
 0x2f8   : > { %v773_v13 = vmul.f32 1.442695, %v771_v11  ;;  %v770_v14 = vpop.xlane.xlu0 %769 }
 0x2f9   : > { %1447 = vpow2.f32 %v678_v12  ;;  %v772_v15 = vsub.f32 %v764_v50, %v770_v14  ;;  %v863_v16 = vpop.xlane.xlu1 %862  ;;  %v449_v12 = vld [vmem:[%s1781_s6] sm:$0xff] }
 0x2fa   : > { %v1442_v17 = vpop.eup %1441  ;;  %1449 = vpow2.f32 %v773_v13  ;;  %v867_v18 = vsub.f32 %v859_v56, %v863_v16  ;;  %v450_v14 = vpack.c.bf16 %v449_v12, %v449_v12 }
 0x2fb   : > { %v775_v19 = vmul.f32 1.442695, %v772_v15  ;;  %v587_v20 = vsel %vm574_vm5, %v1442_v17, 0.0 }
 0x2fc   : > { %v869_v21 = vmul.f32 1.442695, %v867_v18  ;;  %v866_v22 = vpop.xlane.xlu0 %865  ;;  %588 = vadd.xlane.f32.xlu1 %v587_v20 }
 0x2fd   : > { %1451 = vpow2.f32 %v775_v19  ;;  %v868_v23 = vsub.f32 %v860_v58, %v866_v22  ;;  %v693_v24 = vpop.permute.xlu1 %692 }
 0x2fe   : > { %v1444_v25 = vpop.eup %1443  ;;  %1453 = vpow2.f32 %v869_v21  ;;  %1372 = vmatpush3.bf16.msra.mxu0 %v693_v24 }
 0x2ff   : > { %v1446_v26 = vpop.eup %1445  ;;  %v871_v27 = vmul.f32 1.442695, %v868_v23  ;;  %v680_v28 = vsel %vm574_vm5, %v1444_v25, 0.0  ;;  %1383 = vmatprep.subr.bf16.mxu0 %v1489_v2 }
 0x300   : > { %v590_v29 = vsel %vm574_vm5, %v1446_v26, 0.0  ;;  %681 = vadd.xlane.f32.xlu1 %v680_v28 }
 0x301   : > { %1455 = vpow2.f32 %v871_v27  ;;  %591 = vadd.xlane.f32.xlu0 %v590_v29 }
 0x303   : > { %v1448_v30 = vpop.eup %1447 }
 0x304   : > { %v1450_v31 = vpop.eup %1449  ;;  %v683_v32 = vsel %vm574_vm5, %v1448_v30, 0.0 }
 0x305   : > { %684 = vadd.xlane.f32.xlu0 %v683_v32  ;;  %v777_v33 = vsel %vm574_vm5, %v1450_v31, 0.0 }
 0x306   : > { %778 = vadd.xlane.f32.xlu1 %v777_v33 }
 0x307   : > { %v1452_v34 = vpop.eup %1451 }
 0x308   : > { %v1454_v35 = vpop.eup %1453  ;;  %v780_v36 = vsel %vm574_vm5, %v1452_v34, 0.0 }
 0x309   : > { %781 = vadd.xlane.f32.xlu0 %v780_v36  ;;  %v873_v38 = vsel %vm574_vm5, %v1454_v35, 0.0 }
 0x30a   : > { %874 = vadd.xlane.f32.xlu1 %v873_v38 }
 0x30b   : > { %v1456_v39 = vpop.eup %1455 }
 0x30c   : > { %v876_v40 = vsel %vm574_vm5, %v1456_v39, 0.0 }
 0x30d   : > { %877 = vadd.xlane.f32.xlu0 %v876_v40 }
 0x31b   : > { %884 = vrot.lane.b32.xlu1 %v1645_v37, %s1496_s22  ;;  %s359_s22 = scalar_lea.vmem %s1785_s10, %s1305_s29 }
 0x323   : > { %788 = vrot.lane.b32.xlu0 %v1645_v37, %s1497_s23 }
 0x389   : > { %v589_v41 = vpop.xlane.xlu1 %588 }
 0x38a   : > { %1457 = vrcp.f32 %v589_v41 }
 0x38d   : > { %v682_v42 = vpop.xlane.xlu1 %681 }
 0x38e   : > { %v592_v43 = vpop.xlane.xlu0 %591 }
 0x38f   : > { %1459 = vrcp.f32 %v592_v43 }
 0x390   : > { %1461 = vrcp.f32 %v682_v42 }
 0x392   : > { %v685_v44 = vpop.xlane.xlu0 %684 }
 0x393   : > { %1463 = vrcp.f32 %v685_v44  ;;  %v779_v45 = vpop.xlane.xlu1 %778 }
 0x394   : > { %1465 = vrcp.f32 %v779_v45  ;;  %v1458_v47 = vpop.eup %1457 }
 0x395   : > { %v595_v50 = vmul.f32 %v1458_v47, %v1442_v17  ;;  %v982_v17 = vsel %vm458_vm2, %v450_v14, 0 }
 0x396   : > { %v782_v46 = vpop.xlane.xlu0 %781 }
 0x397   : > { %1467 = vrcp.f32 %v782_v46  ;;  %v875_v48 = vpop.xlane.xlu1 %874 }
 0x398   : > { %1469 = vrcp.f32 %v875_v48 }
 0x399   : > { %v1460_v49 = vpop.eup %1459 }
 0x39a   : > { %v596_v51 = vmul.f32 %v1460_v49, %v1446_v26  ;;  %v878_v52 = vpop.xlane.xlu0 %877  ;;  %v1462_v37 = vpop.eup %1461 }
 0x39b   : > { %1471 = vrcp.f32 %v878_v52  ;;  %v688_v57 = vmul.f32 %v1462_v37, %v1444_v25  ;;  %v885_v3 = vpop.permute.xlu1 %884  ;;  %v451_v25 = vld [vmem:[%s1782_s7] sm:$0xff] }
 0x39c   : > { %v597_v54 = vpack.c.bf16 %v596_v51, %v595_v50  ;;  %v452_v27 = vpack.c.bf16 %v451_v25, %v451_v25 }
 0x39d   : > { %v1464_v56 = vpop.eup %1463 }
 0x39e   : > { %v689_v58 = vmul.f32 %v1464_v56, %v1448_v30  ;;  %v789_v59 = vpop.permute.xlu0 %788  ;;  %1368 = vmatmul.mubr.msk.bf16.vlgmr.msra.gmra.mrb[8].mxu1 %vm574_vm5, %v597_v54  ;;  %v1466_v60 = vpop.eup %1465  ;;  %v1031_v30 = vsel %vm1029_vm8, %v452_v27, 0 }
 0x39f   : > { %1378 = vmatpush3.bf16.msra.mxu1 %v789_v59  ;;  %1379 = vmatprep.mubr.msk.bf16.mxu1 %vm1490_vm1, %v1489_v2  ;;  %v785_v0 = vmul.f32 %v1466_v60, %v1450_v31 }
 0x3a0   : > { %v690_v61 = vpack.c.bf16 %v689_v58, %v688_v57  ;;  %1389 = vmatprep.subr.bf16.mxu1 %v1489_v2 }
 0x3a1   : > { %v1468_v63 = vpop.eup %1467 }
 0x3a2   : > { %v786_v1 = vmul.f32 %v1468_v63, %v1452_v34  ;;  %1374 = vmatmul.mubr.msk.bf16.vlgmr.msra.gmra.mrb[4].mxu0 %vm574_vm5, %v690_v61  ;;  %v1470_v4 = vpop.eup %1469  ;;  %v453_v61 = vld [vmem:[%s1783_s8] sm:$0x1] }
 0x3a3   : > { %1384 = vmatpush3.bf16.msra.mxu0 %v885_v3  ;;  %1385 = vmatprep.mubr.msk.bf16.mxu0 %vm1490_vm1, %v1489_v2  ;;  %v881_v7 = vmul.f32 %v1470_v4, %v1454_v35  ;;  %v454_v63 = vpack.c.bf16 %v453_v61, %v453_v61 }
 0x3a4   : > { %v787_v5 = vpack.c.bf16 %v786_v1, %v785_v0  ;;  %1395 = vmatprep.subr.bf16.mxu0 %v1489_v2 }
 0x3a5   : > { %v1472_v6 = vpop.eup %1471 }
 0x3a6   : > { %v882_v8 = vmul.f32 %v1472_v6, %v1456_v39  ;;  %1380 = vmatmul.mubr.msk.bf16.vlgmr.msra.gmra.mrb[12].mxu1 %vm574_vm5, %v787_v5  ;;  %v1297_v39 = vld [vmem:[%s1780_s5] ss:$0 sm:$0xff] }
 0x3a7   : > { %1391 = vmatprep.mubr.msk.bf16.mxu1 %vm1490_vm1, %v1489_v2 }
 0x3a8   : > { %v883_v9 = vpack.c.bf16 %v882_v8, %v881_v7  ;;  %1390 = vmatpush3.bf16.xpose.msra.mxu1 %v982_v17 }
 0x3a9   : > { %1401 = vmatprep.subr.bf16.mxu1 %v1489_v2 }
 0x3aa   : > { %1386 = vmatmul.mubr.msk.bf16.vlgmr.msra.gmra.mrb[8].mxu0 %vm574_vm5, %v883_v9 }
 0x3ab   : > { %1397 = vmatprep.mubr.msk.bf16.mxu0 %vm1490_vm1, %v1489_v2  ;;  %1396 = vmatpush3.bf16.msra.mxu0 %v1031_v30 }
 0x3ac   : > { %1407 = vmatprep.subr.bf16.mxu0 %v1489_v2 }
 0x471   : > { %v635_v11 = vpop.f32.mrb[8].mxu1 }
 0x472   : > { %v1369_v13 = vpop.f32.mrb[9].mxu1 }
 0x473   : > { %v638_v15 = vpop.f32.mrb[10].mxu1 }
 0x474   : > { %v1370_v16 = vpop.f32.mrb[11].mxu1 }
 0x475   : > { %v732_v18 = vpop.f32.mrb[4].mxu0 }
 0x476   : > { %933 = vrot.lane.b32.xlu1 %v732_v18, %s1498_s26  ;;  %v1375_v19 = vpop.f32.mrb[5].mxu0 }
 0x477   : > { %v735_v20 = vpop.f32.mrb[6].mxu0 }
 0x478   : > { %935 = vrot.lane.b32.xlu0 %v735_v20, %s1498_s26  ;;  %v1376_v21 = vpop.f32.mrb[7].mxu0 }
 0x479   : > { %v828_v22 = vpop.f32.mrb[12].mxu1 }
 0x47a   : > { %v1381_v23 = vpop.f32.mrb[13].mxu1  ;;  %941 = vrot.lane.b32.xlu1 %v828_v22, %s1499_s27 }
 0x47b   : > { %v831_v24 = vpop.f32.mrb[14].mxu1 }
 0x47c   : > { %v1382_v26 = vpop.f32.mrb[15].mxu1  ;;  %943 = vrot.lane.b32.xlu0 %v831_v24, %s1499_s27 }
 0x47d   : > { %v924_v28 = vpop.f32.mrb[8].mxu0 }
 0x47e   : > { %949 = vrot.lane.b32.xlu1 %v924_v28, %s1500_s11  ;;  %v1387_v29 = vpop.f32.mrb[9].mxu0 }
 0x47f   : > { %v927_v31 = vpop.f32.mrb[10].mxu0 }
 0x480   : > { %951 = vrot.lane.b32.xlu0 %v927_v31, %s1500_s11  ;;  %v1388_v32 = vpop.f32.mrb[11].mxu0 }
 0x4e8   : > { %v934_v33 = vpop.permute.xlu1 %933 }
 0x4e9   : > { %v955_v38 = vsel %vm574_vm5, %v635_v11, %v934_v33 }
 0x4ea   : > { %v936_v34 = vpop.permute.xlu0 %935 }
 0x4eb   : > { %v956_v42 = vsel %vm574_vm5, %v638_v15, %v936_v34 }
 0x4ec   : > { %v942_v35 = vpop.permute.xlu1 %941 }
 0x4ed   : > { %v958_v40 = vsel %vm957_vm9, %v955_v38, %v942_v35  ;;  %v1301_v38 = vld [vmem:[%s1784_s9] ss:$0 sm:$0xff] }
 0x4ee   : > { %v944_v36 = vpop.permute.xlu0 %943 }
 0x4ef   : > { %v959_v44 = vsel %vm957_vm9, %v956_v42, %v944_v36 }
 0x4f0   : > { %v950_v41 = vpop.permute.xlu1 %949 }
 0x4f1   : > { %v961_v43 = vsel %vm960_vm10, %v958_v40, %v950_v41 }
 0x4f2   : > { %v969_v45 = vadd.f32 %v1297_v39, %v961_v43  ;;  %v952_v46 = vpop.permute.xlu0 %951 }
 0x4f3   : > { %v962_v47 = vsel %vm960_vm10, %v959_v44, %v952_v46 }
 0x4f4   : > { %v973_v48 = vmul.f32 0.01, %v969_v45  ;;  %v970_v49 = vadd.f32 %v1297_v39, %v962_v47  ;;  %vm971_vm11 = vcmp.gt.f32.partialorder %v969_v45, 0.0 }
 0x4f6   : > { %vm972_vm12 = vcmp.gt.f32.partialorder %v970_v49, 0.0  ;;  %v974_v50 = vmul.f32 0.01, %v970_v49  ;;  %v975_v51 = vsel %vm971_vm11, %v969_v45, %v973_v48 }
 0x4f8   : > { %v976_v52 = vsel %vm972_vm12, %v970_v49, %v974_v50 }
 0x4f9   : > { %v977_v37 = vpack.c.bf16 %v976_v52, %v975_v51 }
 0x4fb   : > { %1392 = vmatmul.mubr.msk.bf16.vlgmr.msra.gmra.mrb[16].mxu1 %vm458_vm2, %v977_v37 }
 0x4fc   : > { %1403 = vmatprep.mubr.msk.bf16.mxu1 %vm1490_vm1, %v1489_v2 }
 0x5ce   : > { %v1018_v54 = vpop.f32.mrb[16].mxu1 }
 0x5cf   : > { %v1393_v56 = vpop.f32.mrb[17].mxu1 }
 0x5d0   : > { %v1021_v57 = vpop.f32.mrb[18].mxu1 }
 0x5d1   : > { %v1025_v58 = vpack.c.bf16 %v1021_v57, %v1018_v54  ;;  %v1394_v59 = vpop.f32.mrb[19].mxu1 }
 0x5d3   : > { %1398 = vmatmul.mubr.msk.bf16.vlgmr.msra.gmra.mrb[12].mxu0 %vm378_vm0, %v1025_v58  ;;  %v1027_v60 = vsel %vm378_vm0, %v1025_v58, 0 }
 0x5d4   : > { %1408 = vmatpush3.bf16.msra.mxu0 %v1025_v58  ;;  %1402 = vmatpush3.bf16.xpose.msra.mxu1 %v1027_v60 }
 0x5d5   : > { %1409 = vmatprep.mubr.msk.bf16.mxu0 %vm1490_vm1, %v1489_v2 }
 0x5db   : > { %1404 = vmatmul.mubr.msk.bf16.vlgmr.msra.gmra.mrb[20].mxu1 %vm378_vm0, %v454_v63 }
 0x6a6   : > { %v1067_v0 = vpop.f32.mrb[12].mxu0 }
 0x6a7   : > { %1119 = vperm.xlu1 %1439, %v1067_v0   ;;  %v1399_v1 = vpop.f32.mrb[13].mxu0 }
 0x6a8   : > { %v1070_v3 = vpop.f32.mrb[14].mxu0 }
 0x6a9   : > { %1124 = vperm.xlu0 %1440, %v1070_v3   ;;  %v1400_v4 = vpop.f32.mrb[15].mxu0 }
 0x6ae   : > { %v1111_v5 = vpop.f32.mrb[20].mxu1 }
 0x6af   : > { %v1405_v6 = vpop.f32.mrb[21].mxu1  ;;  %v1130_v9 = vrot.slane %v1111_v5, %v558_v55 }
 0x6b0   : > { %v1114_v7 = vpop.f32.mrb[22].mxu1 }
 0x6b1   : > { %v1406_v8 = vpop.f32.mrb[23].mxu1 }
 0x726   : > { %v1120_v11 = vpop.permute.xlu1 %1119 }
 0x727   : > { %v1131_v12 = vadd.f32 %v1130_v9, %v1120_v11 }
 0x728   : > { %v1125_v13 = vpop.permute.xlu0 %1124 }
 0x729   : > { %vm1133_vm1 = vcmp.gt.f32.partialorder %v1131_v12, 0.0  ;;  %v1135_v2 = vmul.f32 0.2, %v1131_v12  ;;  %v1132_v14 = vadd.f32 %v1130_v9, %v1125_v13 }
 0x72b   : > { %vm1134_vm2 = vcmp.gt.f32.partialorder %v1132_v14, 0.0  ;;  %v1136_v15 = vmul.f32 0.2, %v1132_v14  ;;  %v1137_v16 = vsel %vm1133_vm1, %v1131_v12, %v1135_v2 }
 0x72c   : > { %v1139_v17 = vmul.f32 %v1137_v16, %v1675_v62 }
 0x72d   : > { %v1138_v18 = vsel %vm1134_vm2, %v1132_v14, %v1136_v15 }
 0x72e   : > { %vm1141_vm13 = vcmp.eq.f32.partialorder %v1139_v17, 0.0  ;;  %v1140_v19 = vmul.f32 %v1138_v18, %v1682_v10 }
 0x72f   : > { %v1143_v20 = vsel %vm1141_vm13, -1e+16, %v1139_v17 }
 0x730   : > { %v1145_v21 = vsel %vm574_vm5, %v1143_v20, -inf  ;;  %vm1142_vm14 = vcmp.eq.f32.partialorder %v1140_v19, 0.0 }
 0x731   : > { %1146 = vmax.xlane.f32.xlu1 %v1145_v21  ;;  %v1144_v53 = vsel %vm1142_vm14, -1e+16, %v1140_v19 }
 0x732   : > { %v1148_v55 = vsel %vm574_vm5, %v1144_v53, -inf }
 0x733   : > { %1149 = vmax.xlane.f32.xlu0 %v1148_v55 }
 0x7be   : > { %v1147_v22 = vpop.xlane.xlu1 %1146 }
 0x7bf   : > { %v1151_v23 = vsub.f32 %v1143_v20, %v1147_v22 }
 0x7c0   : > { %v1150_v24 = vpop.xlane.xlu0 %1149 }
 0x7c1   : > { %v1153_v25 = vmul.f32 1.442695, %v1151_v23  ;;  %v1152_v26 = vsub.f32 %v1144_v53, %v1150_v24 }
 0x7c3   : > { %1473 = vpow2.f32 %v1153_v25  ;;  %v1155_v62 = vmul.f32 1.442695, %v1152_v26 }
 0x7c5   : > { %1475 = vpow2.f32 %v1155_v62 }
 0x7cd   : > { %v1474_v27 = vpop.eup %1473 }
 0x7ce   : > { %v1157_v10 = vsel %vm574_vm5, %v1474_v27, 0.0 }
 0x7cf   : > { %v1476_v28 = vpop.eup %1475  ;;  %1158 = vadd.xlane.f32.xlu1 %v1157_v10 }
 0x7d0   : > { %v1160_v29 = vsel %vm574_vm5, %v1476_v28, 0.0 }
 0x7d1   : > { %1161 = vadd.xlane.f32.xlu0 %v1160_v29 }
 0x85c   : > { %v1159_v30 = vpop.xlane.xlu1 %1158 }
 0x85d   : > { %1477 = vrcp.f32 %v1159_v30 }
 0x85e   : > { %v1162_v31 = vpop.xlane.xlu0 %1161 }
 0x85f   : > { %1479 = vrcp.f32 %v1162_v31 }
 0x867   : > { %v1478_v32 = vpop.eup %1477 }
 0x868   : > { %v1165_v34 = vmul.f32 %v1478_v32, %v1474_v27 }
 0x869   : > { %v1480_v33 = vpop.eup %1479 }
 0x86a   : > { %v1166_v35 = vmul.f32 %v1480_v33, %v1476_v28 }
 0x86c   : > { %v1167_v36 = vpack.c.bf16 %v1166_v35, %v1165_v34 }
 0x86e   : > { %1410 = vmatmul.mubr.msk.bf16.vlgmr.msra.gmra.mrb[16].mxu0 %vm574_vm5, %v1167_v36 }
 0x941   : > { %v1211_v39 = vpop.f32.mrb[16].mxu0 }
 0x942   : > { %v1212_v40 = vadd.f32 %v1301_v38, %v1211_v39  ;;  %v1411_v41 = vpop.f32.mrb[17].mxu0 }
 0x943   : > { %v1214_v42 = vpop.f32.mrb[18].mxu0 }
 0x944   : > { %vm1218_vm15 = vcmp.gt.f32.partialorder %v1212_v40, 0.0  ;;  %v1220_v43 = vmul.f32 0.01, %v1212_v40  ;;  %v1215_v44 = vadd.f32 %v1301_v38, %v1214_v42  ;;  %v1412_v45 = vpop.f32.mrb[19].mxu0 }
 0x946   : > { %v1222_v46 = vsel %vm1218_vm15, %v1212_v40, %v1220_v43  ;;  %vm1219_vm3 = vcmp.gt.f32.partialorder %v1215_v44, 0.0  ;;  %v1221_v47 = vmul.f32 0.01, %v1215_v44 }
 0x947   : > { %1224 = vst.msk [vmem:[%s359_s22] sm:$0xff] %vm378_vm0, %v1222_v46 }
 0x948   : > { %v1223_v48 = vsel %vm1219_vm3, %v1215_v44, %v1221_v47 }
 0x949   : > { %1225 = vst.msk [vmem:[%s359_s22 + $0x8] sm:$0xff] %vm378_vm0, %v1223_v48 }
 0x94a PF: > { %s20_s13 = sadd.s32 1, %s1487_s13  }
 0x94b   : > { %p17_p4 = scmp.ge.s32.totalorder %s20_s13, 4  }
 0x94d   :  { %19 = sbr.rel (!%p17_p4) target bundleno = 1 (0x1), region = 90 }

</bundles_post_ra>
